<compile_context>
chip_gen: v5e
topology: v5e:2x2
jax: 0.10.0
libtpu: 0.0.40
codegen_flags: <defaults>
</compile_context>

<pallas_src>
import math

import jax
import jax.numpy as jnp
from jax.experimental import pallas as pl
from jax.experimental.pallas import tpu as pltpu

_LANE = 128                      # vreg lane width (last dim of every block)
_TARGET_BLOCK_BYTES = 4 << 20    # ~4 MiB per pipeline buffer; 3 arrays x 2 buffers ~= 24 MiB
_MIN_SPLIT_BYTES = 1 << 20       # force >=2 grid steps above ~1 MiB (v7x dual-TC streaming)
_VMEM_LIMIT_BYTES = 48 << 20     # > v5e's 16 MiB scoped default, < v7x's 64 MiB physical VMEM


def _sublane(dtype):
    """Sublane packing factor: 8 for 32-bit, 16 for 16-bit, 32 for 8-bit dtypes."""
    bits = jnp.dtype(dtype).itemsize * 8
    return max(8, 256 // bits)


def _pick_tile(rows, dtype):
    """Rows per grid step: multi-MiB blocks, dtype-aware sublane alignment, and
    >= 2 grid steps for mid/large tensors so both v7x TensorCores stream."""
    itemsize = jnp.dtype(dtype).itemsize
    sub = _sublane(dtype)
    max_tile = max(sub, (_TARGET_BLOCK_BYTES // (_LANE * itemsize)) // sub * sub)
    if rows > max_tile:
        return max_tile
    split_rows = max(sub, _MIN_SPLIT_BYTES // (_LANE * itemsize))
    if rows > split_rows:
        half = -(-rows // 2)
        return max(sub, -(-half // sub) * sub)
    return rows  # tiny: single block spanning the full extent


# ---------------------------------------------------------------------------
# Kernels
# ---------------------------------------------------------------------------
def _add_kernel(a_ref, b_ref, o_ref):
    o_ref[...] = a_ref[...] + b_ref[...]


def _add_scalar_kernel(a_ref, s_ref, o_ref):
    # s_ref is a (1, 1) block with a constant index_map: stays resident in VMEM.
    o_ref[...] = a_ref[...] + s_ref[0, 0]


# ---------------------------------------------------------------------------
# Hot paths
# ---------------------------------------------------------------------------
def _add_same_shape(a, b):
    """a + b with a.shape == b.shape.  Aligned prefix -> one Pallas call;
    sub-128-element tail (if any) -> plain XLA.  No host-side padding."""
    out_shape, dtype = a.shape, a.dtype
    n = a.size
    if n == 0:
        return jnp.zeros(out_shape, dtype)
    af, bf = a.reshape(-1), b.reshape(-1)
    n_main = (n // _LANE) * _LANE
    if n_main == 0:                       # < 128 elements: not worth a kernel launch
        return (af + bf).reshape(out_shape)

    rows = n_main // _LANE
    tile = _pick_tile(rows, dtype)
    itemsize = jnp.dtype(dtype).itemsize
    a2 = (af if n_main == n else af[:n_main]).reshape(rows, _LANE)
    b2 = (bf if n_main == n else bf[:n_main]).reshape(rows, _LANE)

    out2 = pl.pallas_call(
        _add_kernel,
        out_shape=jax.ShapeDtypeStruct((rows, _LANE), dtype),
        grid_spec=pl.GridSpec(
            grid=(pl.cdiv(rows, tile),),          # partial last block masked by Pallas
            in_specs=[
                pl.BlockSpec((tile, _LANE), lambda i: (i, 0)),
                pl.BlockSpec((tile, _LANE), lambda i: (i, 0)),
            ],
            out_specs=pl.BlockSpec((tile, _LANE), lambda i: (i, 0)),
        ),
        compiler_params=pltpu.CompilerParams(
            dimension_semantics=("parallel",),
            vmem_limit_bytes=_VMEM_LIMIT_BYTES,
        ),
        cost_estimate=pl.CostEstimate(
            flops=rows * _LANE,
            transcendentals=0,
            bytes_accessed=3 * rows * _LANE * itemsize,
        ),
    )(a2, b2)

    main = out2.reshape(-1)
    if n_main == n:
        return main.reshape(out_shape)
    tail = af[n_main:] + bf[n_main:]              # < 128 elements, plain XLA
    return jnp.concatenate([main, tail]).reshape(out_shape)


def _add_scalar(a, s):
    """a + scalar s: scalar kept resident in VMEM, no broadcast_to HBM pass."""
    out_shape, dtype = a.shape, a.dtype
    n = a.size
    s2 = s.reshape(1, 1)
    if n == 0:
        return jnp.zeros(out_shape, dtype)
    af = a.reshape(-1)
    n_main = (n // _LANE) * _LANE
    if n_main == 0:
        return (af + s2[0, 0]).reshape(out_shape)

    rows = n_main // _LANE
    tile = _pick_tile(rows, dtype)
    itemsize = jnp.dtype(dtype).itemsize
    a2 = (af if n_main == n else af[:n_main]).reshape(rows, _LANE)

    out2 = pl.pallas_call(
        _add_scalar_kernel,
        out_shape=jax.ShapeDtypeStruct((rows, _LANE), dtype),
        grid_spec=pl.GridSpec(
            grid=(pl.cdiv(rows, tile),),
            in_specs=[
                pl.BlockSpec((tile, _LANE), lambda i: (i, 0)),
                pl.BlockSpec((1, 1), lambda i: (0, 0)),   # resident scalar block
            ],
            out_specs=pl.BlockSpec((tile, _LANE), lambda i: (i, 0)),
        ),
        compiler_params=pltpu.CompilerParams(
            dimension_semantics=("parallel",),
            vmem_limit_bytes=_VMEM_LIMIT_BYTES,
        ),
        cost_estimate=pl.CostEstimate(
            flops=rows * _LANE,
            transcendentals=0,
            bytes_accessed=2 * rows * _LANE * itemsize,
        ),
    )(a2, s2)

    main = out2.reshape(-1)
    if n_main == n:
        return main.reshape(out_shape)
    tail = af[n_main:] + s2[0, 0]
    return jnp.concatenate([main, tail]).reshape(out_shape)


# ---------------------------------------------------------------------------
# Public entry point (torch.add semantics: dtype promotion + broadcasting)
# ---------------------------------------------------------------------------
@jax.jit
def pallas_add(a, b):
    a = jnp.asarray(a)
    b = jnp.asarray(b)
    out_dtype = jnp.result_type(a.dtype, b.dtype)
    out_shape = jnp.broadcast_shapes(a.shape, b.shape)
    a = a.astype(out_dtype)
    b = b.astype(out_dtype)

    # Genuine scalar operand: broadcast inside the kernel (no HBM copy).
    if b.size == 1 and a.shape == out_shape:
        return _add_scalar(a, b)
    if a.size == 1 and b.shape == out_shape:
        return _add_scalar(b, a)

    # TODO(synk): non-scalar broadcast operands (e.g. bias rows) still use a
    # materialized broadcast; a constant-index BlockSpec per broadcast dim
    # would remove that extra HBM pass.
    if a.shape != out_shape:
        a = jnp.broadcast_to(a, out_shape)
    if b.shape != out_shape:
        b = jnp.broadcast_to(b, out_shape)
    return _add_same_shape(a, b)


# ---------------------------------------------------------------------------
# Module wrapper mirroring nn.Module `Add`
# ---------------------------------------------------------------------------
class AddPallas:
    def __init__(self, arg):
        self.arg = arg  # kept for parity with the PyTorch module (unused)

    def forward(self, x):
        return pallas_add(x[0], x[1])

    __call__ = forward


# ---------------------------------------------------------------------------
if __name__ == "__main__":
    key = jax.random.PRNGKey(0)
    k0, k1, k2, k3 = jax.random.split(key, 4)

    model = AddPallas(arg=None)

    # 1) Standard same-shape elementwise add (lane-aligned).
    x0 = jax.random.normal(k0, (2, 4, 16, 16), jnp.float32)
    x1 = jax.random.normal(k1, (2, 4, 16, 16), jnp.float32)
    out = model((x0, x1))
    jax.block_until_ready(out)
    ref = x0 + x1
    assert out.shape == ref.shape
    assert jnp.max(jnp.abs(out - ref)) < 1e-6

    # 2) Non-128-multiple element count: aligned prefix in the kernel, tail in XLA.
    y0 = jax.random.normal(k2, (2, 4, 13, 13), jnp.float32)
    y1 = jax.random.normal(k3, (2, 4, 13, 13), jnp.float32)
    out2 = model((y0, y1))
    jax.block_until_ready(out2)
    assert jnp.max(jnp.abs(out2 - (y0 + y1))) < 1e-6

    # 3) Scalar second operand: handled in-kernel, no broadcast materialization.
    s = jnp.float32(0.5)
    out3 = model((x0, s))
    jax.block_until_ready(out3)
    assert jnp.max(jnp.abs(out3 - (x0 + s))) < 1e-6

    print("KERNEL_OK")
</pallas_src>

<mosaic_0001>
module attributes {stable_mosaic.version = 11 : i64} {
  func.func @_add_kernel(%arg0: i32, %arg1: memref<16x128xf32, #tpu.memory_space<vmem>>, %arg2: memref<16x128xf32, #tpu.memory_space<vmem>>, %arg3: memref<16x128xf32, #tpu.memory_space<vmem>>) attributes {dimension_semantics = [#tpu.dimension_semantics<parallel>], iteration_bounds = array<i64: 1>, scalar_prefetch = 0 : i64, scratch_operands = 0 : i64, tpu.core_type = #tpu.core_type<tc>, window_params = [{transform_indices = @transform_0, window_bounds = array<i64: 16, 128>}, {transform_indices = @transform_1, window_bounds = array<i64: 16, 128>}, {transform_indices = @transform_2, window_bounds = array<i64: 16, 128>}]} {
    %c0 = arith.constant 0 : index
    %c0_0 = arith.constant 0 : index
    %0 = vector.load %arg1[%c0, %c0_0] : memref<16x128xf32, #tpu.memory_space<vmem>>, vector<16x128xf32>
    %c0_1 = arith.constant 0 : index
    %c0_2 = arith.constant 0 : index
    %1 = vector.load %arg2[%c0_1, %c0_2] : memref<16x128xf32, #tpu.memory_space<vmem>>, vector<16x128xf32>
    %2 = arith.addf %0, %1 : vector<16x128xf32>
    %c0_3 = arith.constant 0 : index
    %c0_4 = arith.constant 0 : index
    %3 = vector.load %arg3[%c0_3, %c0_4] : memref<16x128xf32, #tpu.memory_space<vmem>>, vector<16x128xf32>
    tpu.vector_store %arg3[%c0_3, %c0_4], %2 {strides = array<i32>} : memref<16x128xf32, #tpu.memory_space<vmem>>, vector<16x128xf32>,
    return
  }
  func.func @transform_0(%arg0: i32) -> (i32, i32) {
    %c0_i32 = arith.constant 0 : i32
    %c0_i32_0 = arith.constant 0 : i32
    return %arg0, %c0_i32 : i32, i32
  }
  func.func @transform_1(%arg0: i32) -> (i32, i32) {
    %c0_i32 = arith.constant 0 : i32
    %c0_i32_0 = arith.constant 0 : i32
    return %arg0, %c0_i32 : i32, i32
  }
  func.func @transform_2(%arg0: i32) -> (i32, i32) {
    %c0_i32 = arith.constant 0 : i32
    %c0_i32_0 = arith.constant 0 : i32
    return %arg0, %c0_i32 : i32, i32
  }
}

</mosaic_0001>

<bundles_post_ra>
// kernel: pallas_add.1
= control target key start
LH: loop header
LB: loop body
LE: loop exit
PB: predicated region body
PF: predicated region fallthrough
CT: control target
= control target key end

     0   :  { %s56_s0 = inlined_call_operand.vmem [shape: f32[16,128], index: 0, kind: input, shape index: {}]   ;;  %s57_s1 = inlined_call_operand.vmem [shape: f32[16,128], index: 1, kind: input, shape index: {}]   ;;  %s58_s2 = inlined_call_operand.vmem [shape: f32[16,128], index: 2, kind: output, shape index: {}]  }
   0x1   :  { %v11_v0 = vld [vmem:[%s56_s0] sm:$0xff]  ;;  %v12_v2 = vld [vmem:[%s56_s0 + $0x8] sm:$0xff] }
   0x2   :  { %v13_v1 = vld [vmem:[%s57_s1] sm:$0xff]  ;;  %v14_v4 = vld [vmem:[%s57_s1 + $0x8] sm:$0xff] }
   0x3   :  { %v15_v3 = vadd.f32 %v13_v1, %v11_v0  ;;  %v16_v5 = vadd.f32 %v14_v4, %v12_v2 }
   0x5   :  { %17 = vst [vmem:[%s58_s2] sm:$0xff] %v15_v3 }
   0x6   :  { %18 = vst [vmem:[%s58_s2 + $0x8] sm:$0xff] %v16_v5 }

</bundles_post_ra>
